<compile_context>
chip_gen: v6e
topology: v6e:2x2x1
jax: 0.10.0
libtpu: 0.0.40
codegen_flags: <defaults>
</compile_context>

<pallas_src>
import functools
import math

import jax
import jax.numpy as jnp
from jax.experimental import pallas as pl
from jax.experimental.pallas import tpu as pltpu

_MIB = 1024 * 1024
_ENABLE_TRIPLE_BUFFERING = True


def _round_up(x, m):
    return ((x + m - 1) // m) * m


# ----------------------------------------------------------------------------
# Generation detection (VMEM budget / MXU width / core count)
# ----------------------------------------------------------------------------
@functools.lru_cache(maxsize=1)
def _tpu_generation():
    kind = ""
    try:
        kind = jax.devices()[0].device_kind.lower()
    except Exception:  # pragma: no cover
        pass

    vmem_bytes = None
    try:
        vmem_bytes = int(pltpu.get_tpu_info().vmem_capacity_bytes)
    except Exception:
        vmem_bytes = None

    is_v7 = ("v7" in kind) or ("tpu7" in kind)
    is_v5e = ("v5 lite" in kind) or ("v5e" in kind) or ("v5litepod" in kind)
    has_big_vmem_kind = any(t in kind for t in ("v4", "v5", "v6"))

    if vmem_bytes is None:
        if is_v7:
            vmem_bytes = 64 * _MIB
        elif has_big_vmem_kind:
            vmem_bytes = 128 * _MIB
        else:
            vmem_bytes = 64 * _MIB  # unknown chip: be conservative

    if vmem_bytes >= 100 * _MIB:           # v5e / v6e (128 MiB VMEM)
        tile_budget = 88 * _MIB
        vmem_limit = 104 * _MIB
    else:                                   # v7x (64 MiB VMEM) or unknown
        tile_budget = 36 * _MIB
        vmem_limit = 48 * _MIB

    prefer_256 = not is_v5e        # v6e/v7x MXU is 2x256x256; v5e is 4x128x128
    num_tc = 2 if is_v7 else 1     # v7x has 2 TensorCores per chip

    return dict(
        vmem_bytes=vmem_bytes,
        tile_budget=tile_budget,
        vmem_limit=vmem_limit,
        prefer_256=prefer_256,
        num_tc=num_tc,
        k_align=256 if prefer_256 else 128,
    )


# ----------------------------------------------------------------------------
# Kernel
# ----------------------------------------------------------------------------
def _matmul_body(x_ref, w_ref, b_ref, o_ref, acc_ref, *, has_bias, separate_acc):
    """One (i, j, k) grid step: acc += X_tile @ Wt_tile (+ bias / cast epilogue)."""
    k = pl.program_id(2)

    @pl.when(k == 0)
    def _init():
        if has_bias and not separate_acc:
            # f32 output block doubles as the accumulator: seed it with the bias.
            acc_ref[...] = jnp.broadcast_to(
                b_ref[...].astype(jnp.float32), acc_ref.shape)
        else:
            acc_ref[...] = jnp.zeros_like(acc_ref)

    acc_ref[...] += jnp.dot(
        x_ref[...], w_ref[...], preferred_element_type=jnp.float32)

    if separate_acc:
        # Narrow output dtype: add bias + downcast only at the last k step.
        @pl.when(k == pl.num_programs(2) - 1)
        def _finalize():
            result = acc_ref[...]
            if has_bias:
                result = result + b_ref[...].astype(jnp.float32)
            o_ref[...] = result.astype(o_ref.dtype)


def _make_rpl_kernel(has_bias, separate_acc):
    """Kernel variants with explicit signatures (bias / scratch specialized away)."""
    if has_bias and separate_acc:
        def kernel(x_ref, w_ref, b_ref, o_ref, acc_ref):
            _matmul_body(x_ref, w_ref, b_ref, o_ref, acc_ref,
                         has_bias=True, separate_acc=True)
    elif has_bias:
        def kernel(x_ref, w_ref, b_ref, o_ref):
            _matmul_body(x_ref, w_ref, b_ref, o_ref, o_ref,
                         has_bias=True, separate_acc=False)
    elif separate_acc:
        def kernel(x_ref, w_ref, o_ref, acc_ref):
            _matmul_body(x_ref, w_ref, None, o_ref, acc_ref,
                         has_bias=False, separate_acc=True)
    else:
        def kernel(x_ref, w_ref, o_ref):
            _matmul_body(x_ref, w_ref, None, o_ref, o_ref,
                         has_bias=False, separate_acc=False)
    return kernel


# ----------------------------------------------------------------------------
# Tile selection (shape-, generation- and VMEM-budget-aware)
# ----------------------------------------------------------------------------
_TM_CANDS = (1024, 768, 512, 384, 256, 128, 64, 32, 16, 8)
_TNK_CANDS_128 = (2048, 1536, 1024, 768, 512, 384, 256, 128)   # v5e (128-wide MXU)
_TNK_CANDS_256 = (2048, 1024, 512, 256, 128)                   # v6e/v7x (256-wide MXU)


def _tile_candidates(dim, cands, *, need_exact, min_tile=1):
    """Descending candidate tile sizes for one dimension.

    need_exact=True  -> only exact divisors (required for the K reduction axis).
    need_exact=False -> partial edge blocks allowed (output writes are masked).
    Full extent (tile == dim) is always legal per the (8,128)/full-dim rule.
    """
    out = []
    if dim <= cands[0]:
        out.append(dim)
    for c in cands:
        if c >= dim or c < min_tile:
            continue
        if need_exact and dim % c:
            continue
        out.append(c)
    if not out:
        out = [dim]   # K is pre-padded at __init__, so this stays benign.
    return sorted(set(out), reverse=True)


def _vmem_bytes(tm, tn, tk, x_bytes, w_bytes, out_bytes, has_bias, separate_acc,
                buffers_x=2, buffers_w=2):
    total = buffers_x * tm * tk * x_bytes      # pipelined X tiles
    total += buffers_w * tk * tn * w_bytes     # pipelined W tiles
    total += 2 * tm * tn * out_bytes           # double-buffered output tiles
    if separate_acc:
        total += tm * tn * 4                   # f32 accumulator scratch
    if has_bias:
        total += 2 * tn * 4                    # bias tiles (f32 worst case)
    return total


def _select_tiles(M, N, K, *, x_bytes, w_bytes, out_bytes,
                  has_bias, separate_acc, gen):
    # bf16 MXU feed packs (16,128) per vreg: 8-row blocks waste half the sublanes.
    min_tm = 16 if x_bytes <= 2 else 8
    tnk_cands = _TNK_CANDS_256 if gen["prefer_256"] else _TNK_CANDS_128

    tm_list = _tile_candidates(M, _TM_CANDS, need_exact=False, min_tile=min_tm)
    tn_list = _tile_candidates(N, tnk_cands, need_exact=False)
    tk_list = _tile_candidates(K, tnk_cands, need_exact=True)

    budget = gen["tile_budget"]
    mi = ni = ki = 0

    def cur_bytes():
        return _vmem_bytes(tm_list[mi], tn_list[ni], tk_list[ki],
                           x_bytes, w_bytes, out_bytes, has_bias, separate_acc)

    while cur_bytes() > budget:
        # Shrink tk first (no HBM re-stream penalty, only per-step overhead).
        if ki + 1 < len(tk_list):
            ki += 1
            continue
        can_m = mi + 1 < len(tm_list)
        can_n = ni + 1 < len(tn_list)
        if not (can_m or can_n):
            break  # TODO(synk): pathological shape; may exceed the VMEM budget.
        # Traffic-aware: shrinking tn adds X re-reads, shrinking tm adds W re-reads.
        dx = math.inf
        dw = math.inf
        if can_n:
            dx = M * K * x_bytes * (pl.cdiv(N, tn_list[ni + 1]) - pl.cdiv(N, tn_list[ni]))
        if can_m:
            dw = K * N * w_bytes * (pl.cdiv(M, tm_list[mi + 1]) - pl.cdiv(M, tm_list[mi]))
        if dx <= dw:
            ni += 1
        else:
            mi += 1

    tm, tn, tk = tm_list[mi], tn_list[ni], tk_list[ki]

    # v7x: make sure both TensorCores get at least one parallel (M,N) block.
    if gen["num_tc"] > 1 and pl.cdiv(M, tm) * pl.cdiv(N, tn) == 1:
        half_n = tn // 2
        half_m = (tm // 2 // 8) * 8
        if half_n >= 128 and half_n % 128 == 0 and pl.cdiv(N, half_n) >= 2:
            tn = half_n
        elif half_m >= max(8, min_tm) and pl.cdiv(M, half_m) >= 2:
            tm = half_m

    return tm, tn, tk


def _pick_buffers(M, K, tm, tn, tk, x_bytes, w_bytes, out_bytes,
                  has_bias, separate_acc, gen):
    """Decode-style (small M, long K grid) shapes may expose DMA latency: try 3 buffers."""
    buffers_x = buffers_w = 2
    if not (_ENABLE_TRIPLE_BUFFERING and hasattr(pl, "Buffered")):
        return buffers_x, buffers_w
    if M <= 256 and (K // tk) >= 4:
        if _vmem_bytes(tm, tn, tk, x_bytes, w_bytes, out_bytes, has_bias,
                       separate_acc, buffers_x=3, buffers_w=3) <= gen["tile_budget"]:
            buffers_x = buffers_w = 3
        elif _vmem_bytes(tm, tn, tk, x_bytes, w_bytes, out_bytes, has_bias,
                         separate_acc, buffers_x=2, buffers_w=3) <= gen["tile_budget"]:
            buffers_w = 3
    return buffers_x, buffers_w


def _make_in_spec(shape, index_map, buffers):
    if buffers > 2 and hasattr(pl, "Buffered"):
        try:
            return pl.BlockSpec(shape, index_map, pipeline_mode=pl.Buffered(buffers))
        except TypeError:
            pass
    return pl.BlockSpec(shape, index_map)


# ----------------------------------------------------------------------------
# pallas_call wrapper
# ----------------------------------------------------------------------------
@functools.partial(
    jax.jit,
    static_argnames=("tm", "tn", "tk", "has_bias", "out_dtype",
                     "buffers_x", "buffers_w", "vmem_limit_bytes"))
def _row_parallel_matmul_2d(x2d, w_t, bias2d, *, tm, tn, tk, has_bias, out_dtype,
                            buffers_x, buffers_w, vmem_limit_bytes):
    """x2d: (M, K), w_t: (K, N), bias2d: (1, N) or None -> (M, N) in out_dtype."""
    M, K = x2d.shape
    Kw, N = w_t.shape
    assert K == Kw, (K, Kw)
    assert K % tk == 0, "K tile must divide K exactly (partial-K accumulation)"

    separate_acc = jnp.dtype(out_dtype) != jnp.dtype(jnp.float32)
    grid_m, grid_n, grid_k = pl.cdiv(M, tm), pl.cdiv(N, tn), K // tk
    grid = (grid_m, grid_n, grid_k)

    in_specs = [
        _make_in_spec((tm, tk), lambda i, j, k: (i, k), buffers_x),
        _make_in_spec((tk, tn), lambda i, j, k: (k, j), buffers_w),
    ]
    operands = [x2d, w_t]
    if has_bias:
        in_specs.append(pl.BlockSpec((1, tn), lambda i, j, k: (0, j)))
        operands.append(bias2d)

    scratch_shapes = (
        [pltpu.VMEM((tm, tn), jnp.float32)] if separate_acc else [])

    # Streamed HBM traffic: X re-read per N block, W re-read per M block.
    flops = 2 * M * N * K
    bytes_accessed = (M * K * x2d.dtype.itemsize * grid_n
                      + K * N * w_t.dtype.itemsize * grid_m
                      + M * N * jnp.dtype(out_dtype).itemsize)
    if has_bias:
        bytes_accessed += N * bias2d.dtype.itemsize * grid_m

    kernel = _make_rpl_kernel(has_bias, separate_acc)

    return pl.pallas_call(
        kernel,
        out_shape=jax.ShapeDtypeStruct((M, N), out_dtype),
        grid_spec=pltpu.PrefetchScalarGridSpec(
            num_scalar_prefetch=0,
            grid=grid,
            in_specs=in_specs,
            out_specs=pl.BlockSpec((tm, tn), lambda i, j, k: (i, j)),
            scratch_shapes=scratch_shapes,
        ),
        compiler_params=pltpu.CompilerParams(
            dimension_semantics=("parallel", "parallel", "arbitrary"),
            vmem_limit_bytes=vmem_limit_bytes,
        ),
        cost_estimate=pl.CostEstimate(
            flops=flops, transcendentals=0, bytes_accessed=bytes_accessed),
    )(*operands)


# ----------------------------------------------------------------------------
# Module wrapper
# ----------------------------------------------------------------------------
class RowParallelLinearPallas:
    """JAX/Pallas port of vLLM RowParallelLinear (tp_size=1, no quant)."""

    def __init__(self, input_size, output_size, bias=True, input_is_parallel=False,
                 skip_bias_add=False, params_dtype=jnp.float32, reduce_results=True,
                 bf16_compute=False, key=None):
        # TODO(synk): tp_size > 1 (split_tensor_along_last_dim + all-reduce) has no
        #             single-chip equivalent; with tp_size == 1 both are no-ops.
        self.tp_size = 1
        self.input_size = input_size
        self.output_size = output_size
        self.input_is_parallel = input_is_parallel
        self.reduce_results = reduce_results
        self.skip_bias_add = skip_bias_add
        self.input_size_per_partition = input_size // self.tp_size

        if not reduce_results and bias and not skip_bias_add:
            raise ValueError("When not reducing the results, adding bias to the "
                             "results can lead to incorrect results")

        if key is None:
            key = jax.random.PRNGKey(0)

        self._gen = _tpu_generation()

        # Precision note: bf16 compute gives ~3x MXU throughput and halves weight
        # HBM traffic; accumulation stays f32 inside the kernel either way.
        # Kept opt-in so the default matches the PyTorch f32 semantics.
        self.compute_dtype = jnp.bfloat16 if bf16_compute else params_dtype

        # Deterministic synthetic weight; same (N, K) shape convention as PyTorch.
        w = jax.random.normal(
            key, (output_size, self.input_size_per_partition),
            dtype=jnp.float32) * 0.02
        self.weight = jnp.asarray(w, dtype=params_dtype)       # (N, K), reference

        # Pre-transposed ONCE so the kernel streams W as (K, N) with no per-call
        # transpose / HBM rewrite.  Large awkward K is zero-padded once so the
        # reduction axis always has an exact 128/256-multiple tile.
        K = self.input_size_per_partition
        self._k_pad = K
        if K > 512 and K % 128 != 0:
            self._k_pad = _round_up(K, self._gen["k_align"])
        w_t = jnp.asarray(w.T, dtype=self.compute_dtype)        # (K, N)
        if self._k_pad != K:
            w_t = jnp.pad(w_t, ((0, self._k_pad - K), (0, 0)))
        self.weight_t = w_t                                      # (K_pad, N)

        # PyTorch module zero-inits the bias.
        self.bias = (jnp.zeros((output_size,), dtype=params_dtype)
                     if bias else None)

    def __call__(self, input_):
        # input_: (..., input_size_per_partition)
        lead_shape = input_.shape[:-1]
        K = input_.shape[-1]
        assert K == self.input_size_per_partition
        out_dtype = input_.dtype

        x2d = input_.reshape(-1, K)
        if x2d.dtype != self.compute_dtype:
            x2d = x2d.astype(self.compute_dtype)
        if self._k_pad != K:
            x2d = jnp.pad(x2d, ((0, 0), (0, self._k_pad - K)))
        M, N = x2d.shape[0], self.output_size
        K_pad = self._k_pad

        add_bias_in_kernel = (self.bias is not None) and (not self.skip_bias_add)
        bias2d = self.bias.reshape(1, N) if add_bias_in_kernel else None

        separate_acc = jnp.dtype(out_dtype) != jnp.dtype(jnp.float32)
        x_bytes = jnp.dtype(self.compute_dtype).itemsize
        w_bytes = jnp.dtype(self.compute_dtype).itemsize
        out_bytes = jnp.dtype(out_dtype).itemsize

        tm, tn, tk = _select_tiles(
            M, N, K_pad,
            x_bytes=x_bytes, w_bytes=w_bytes, out_bytes=out_bytes,
            has_bias=add_bias_in_kernel, separate_acc=separate_acc,
            gen=self._gen)
        buffers_x, buffers_w = _pick_buffers(
            M, K_pad, tm, tn, tk, x_bytes, w_bytes, out_bytes,
            add_bias_in_kernel, separate_acc, self._gen)

        out2d = _row_parallel_matmul_2d(
            x2d, self.weight_t, bias2d,
            tm=tm, tn=tn, tk=tk,
            has_bias=add_bias_in_kernel,
            out_dtype=out_dtype,
            buffers_x=buffers_x, buffers_w=buffers_w,
            vmem_limit_bytes=self._gen["vmem_limit"])
        output = out2d.reshape(*lead_shape, N)

        output_bias = self.bias if self.skip_bias_add else None
        return output, output_bias


# ----------------------------------------------------------------------------
# Demo / correctness checks
# ----------------------------------------------------------------------------
if __name__ == "__main__":
    key = jax.random.PRNGKey(0)
    k_w, k_x = jax.random.split(key)

    batch, seq, input_size, output_size = 2, 8, 32, 64
    x_f32 = jax.random.normal(k_x, (batch, seq, input_size), dtype=jnp.float32)

    # (a) f32 params, bias added inside the kernel ---------------------------
    layer = RowParallelLinearPallas(input_size, output_size, bias=True, key=k_w)
    out, out_bias = layer(x_f32)
    out = jax.block_until_ready(out)
    ref = x_f32 @ layer.weight.T + layer.bias
    assert out.shape == (batch, seq, output_size)
    assert out.dtype == jnp.float32
    assert out_bias is None
    assert jnp.allclose(out, ref, atol=1e-5, rtol=1e-5)

    # (b) bf16 params + skip_bias_add=True (bias returned, not added) --------
    layer_bf16 = RowParallelLinearPallas(
        input_size, output_size, bias=True, skip_bias_add=True,
        params_dtype=jnp.bfloat16, key=k_w)
    out_b, bias_b = layer_bf16(x_f32.astype(jnp.bfloat16))
    out_b = jax.block_until_ready(out_b)
    ref_b = (x_f32.astype(jnp.bfloat16).astype(jnp.float32)
             @ layer_bf16.weight.astype(jnp.float32).T)
    assert out_b.dtype == jnp.bfloat16
    assert bias_b is not None and bias_b.shape == (output_size,)
    assert jnp.allclose(out_b.astype(jnp.float32), ref_b, atol=2e-2, rtol=5e-2)

    # (c) f32 params with opt-in bf16 compute (f32 output, bf16 MXU feed) ----
    layer_fast = RowParallelLinearPallas(
        input_size, output_size, bias=True, bf16_compute=True, key=k_w)
    out_c, _ = layer_fast(x_f32)
    out_c = jax.block_until_ready(out_c)
    assert out_c.dtype == jnp.float32
    assert jnp.allclose(out_c, ref, atol=5e-2, rtol=5e-2)

    print("KERNEL_OK")
</pallas_src>

<mosaic_0001>
module attributes {stable_mosaic.version = 11 : i64} {
  func.func @kernel(%arg0: i32, %arg1: i32, %arg2: i32, %arg3: memref<16x32xf32, #tpu.memory_space<vmem>>, %arg4: memref<32x64xf32, #tpu.memory_space<vmem>>, %arg5: memref<1x64xf32, #tpu.memory_space<vmem>>, %arg6: memref<16x64xf32, #tpu.memory_space<vmem>>) attributes {dimension_semantics = [#tpu.dimension_semantics<parallel>, #tpu.dimension_semantics<parallel>, #tpu.dimension_semantics<arbitrary>], iteration_bounds = array<i64: 1, 1, 1>, scalar_prefetch = 0 : i64, scratch_operands = 0 : i64, tpu.core_type = #tpu.core_type<tc>, window_params = [{transform_indices = @transform_0, window_bounds = array<i64: 16, 32>}, {transform_indices = @transform_1, window_bounds = array<i64: 32, 64>}, {transform_indices = @transform_2, window_bounds = array<i64: 1, 64>}, {transform_indices = @transform_3, window_bounds = array<i64: 16, 64>}]} {
    %c0_i32 = arith.constant 0 : i32
    %0 = arith.cmpi eq, %arg2, %c0_i32 : i32
    %1 = arith.extui %0 : i1 to i32
    %c0_i32_0 = arith.constant 0 : i32
    %2 = arith.cmpi ne, %1, %c0_i32_0 : i32
    scf.if %2 {
      %c0_8 = arith.constant 0 : index
      %c0_9 = arith.constant 0 : index
      %9 = vector.load %arg5[%c0_8, %c0_9] : memref<1x64xf32, #tpu.memory_space<vmem>>, vector<1x64xf32>
      %10 = vector.shape_cast %9 : vector<1x64xf32> to vector<1x64xf32>
      %11 = vector.broadcast %10 : vector<1x64xf32> to vector<16x64xf32>
      %c0_10 = arith.constant 0 : index
      %c0_11 = arith.constant 0 : index
      %12 = vector.load %arg6[%c0_10, %c0_11] : memref<16x64xf32, #tpu.memory_space<vmem>>, vector<16x64xf32>
      tpu.vector_store %arg6[%c0_10, %c0_11], %11 {strides = array<i32>} : memref<16x64xf32, #tpu.memory_space<vmem>>, vector<16x64xf32>,
    } else {
    }
    %c0 = arith.constant 0 : index
    %c0_1 = arith.constant 0 : index
    %3 = vector.load %arg6[%c0, %c0_1] : memref<16x64xf32, #tpu.memory_space<vmem>>, vector<16x64xf32>
    %c0_2 = arith.constant 0 : index
    %c0_3 = arith.constant 0 : index
    %4 = vector.load %arg3[%c0_2, %c0_3] : memref<16x32xf32, #tpu.memory_space<vmem>>, vector<16x32xf32>
    %c0_4 = arith.constant 0 : index
    %c0_5 = arith.constant 0 : index
    %5 = vector.load %arg4[%c0_4, %c0_5] : memref<32x64xf32, #tpu.memory_space<vmem>>, vector<32x64xf32>
    %cst = arith.constant dense<0.000000e+00> : vector<16x64xf32>
    %6 = tpu.matmul %4, %5, %cst {dimension_numbers = #tpu.dot_dimension_numbers<[1], [0], [0], [1], [0, 0, 1, 1], [], []>} : vector<16x32xf32>, vector<32x64xf32>, vector<16x64xf32> -> vector<16x64xf32>
    %7 = arith.addf %3, %6 : vector<16x64xf32>
    %c0_6 = arith.constant 0 : index
    %c0_7 = arith.constant 0 : index
    %8 = vector.load %arg6[%c0_6, %c0_7] : memref<16x64xf32, #tpu.memory_space<vmem>>, vector<16x64xf32>
    tpu.vector_store %arg6[%c0_6, %c0_7], %7 {strides = array<i32>} : memref<16x64xf32, #tpu.memory_space<vmem>>, vector<16x64xf32>,
    return
  }
  func.func @transform_0(%arg0: i32, %arg1: i32, %arg2: i32) -> (i32, i32) {
    %c0_i32 = arith.constant 0 : i32
    return %arg0, %arg2 : i32, i32
  }
  func.func @transform_1(%arg0: i32, %arg1: i32, %arg2: i32) -> (i32, i32) {
    %c0_i32 = arith.constant 0 : i32
    return %arg2, %arg1 : i32, i32
  }
  func.func @transform_2(%arg0: i32, %arg1: i32, %arg2: i32) -> (i32, i32) {
    %c0_i32 = arith.constant 0 : i32
    %c0_i32_0 = arith.constant 0 : i32
    return %c0_i32, %arg1 : i32, i32
  }
  func.func @transform_3(%arg0: i32, %arg1: i32, %arg2: i32) -> (i32, i32) {
    %c0_i32 = arith.constant 0 : i32
    return %arg0, %arg1 : i32, i32
  }
}

</mosaic_0001>

<bundles_post_ra>
// kernel: _row_parallel_matmul_2d.1
= control target key start
LH: loop header
LB: loop body
LE: loop exit
PB: predicated region body
PF: predicated region fallthrough
CT: control target
= control target key end

     0   :  { %8 = vsyncpa [#allocation3], 0  ;;  %s313_s0 = inlined_call_operand.hbm [shape: f32[16,32], index: 0, kind: input, shape index: {}]   ;;  %s314_s1 = inlined_call_operand.hbm [shape: f32[32,64], index: 1, kind: input, shape index: {}]   ;;  %s315_s2 = inlined_call_operand.vmem [shape: f32[1,64], index: 2, kind: input, shape index: {}]   ;;  %s316_s3 = inlined_call_operand.hbm [shape: f32[16,64], index: 3, kind: output, shape index: {}]  }
   0x1   :  { %9 = vsyncpa [#allocation6], 0 }
   0x2   :  { %10 = vsyncpa [#allocation4], 0  ;;  %s261_s12 = smov [#allocation2]  }
   0x3   :  { %s16_s13 = sshll.u32 %s261_s12, 4  ;;  %s17_s13 = int_to_ptr.vmem [resolvable:$true] %s16_s13 }
   0x4   :  { %s203_s14 = scalar_lea.vmem %s17_s13, 256  ;;  %p208_p1 = scmp.lt.s32.totalorder %s17_s13, %s17_s13 }
   0x5   :  { %p204_p0 = scmp.ne.s32.totalorder %s17_s13, %s203_s14  ;;  %p209_p2 = scmp.lt.s32.totalorder %s203_s14, %s203_s14 }
   0x7   :  { %p210_p3 = por %p209_p2, %p208_p1 }
   0x9   :  { %p211_p4 = pnand %p210_p3, %p204_p0 }
   0xb   :  { %214 = shalt.err (!%p211_p4)
}
   0xc   :  { %s262_s15 = smov 128   ;;  %s263_s16 = smov 8  }
   0xd   :  { %22 = dma.hbm_to_vmem [thread:$0]  %s313_s0, 256, %s17_s13, [#allocation3], %s262_s15, %s262_s15, %s263_s16  }
   0xe   :  { %s264_s19 = smov [#allocation5]  }
   0xf   :  { %s28_s20 = sshll.u32 %s264_s19, 4  ;;  %s29_s20 = int_to_ptr.vmem [resolvable:$true] %s28_s20 }
  0x10   :  { %s223_s21 = scalar_lea.vmem %s29_s20, 512  ;;  %p228_p6 = scmp.lt.s32.totalorder %s29_s20, %s29_s20 }
  0x11   :  { %p224_p5 = scmp.ne.s32.totalorder %s29_s20, %s223_s21  ;;  %p229_p7 = scmp.lt.s32.totalorder %s223_s21, %s223_s21 }
  0x13   :  { %p230_p8 = por %p229_p7, %p228_p6 }
  0x15   :  { %p231_p9 = pnand %p230_p8, %p224_p5 }
  0x17   :  { %234 = shalt.err (!%p231_p9)
}
  0x18   :  { %34 = dma.hbm_to_vmem [thread:$0]  %s314_s1, 512, %s29_s20, [#allocation6], %s262_s15, %s262_s15, %s263_s16  }
  0x19   :  { %255 = dma.done.wait [#allocation3], 256  }
  0x1a   :  { %256 = vsyncadd [#allocation3], 4294967040 }
  0x1b   :  { %257 = dma.done.wait [#allocation6], 512  }
  0x1c   :  { %258 = vsyncadd [#allocation6], 4294966784  ;;  %vm65_vm0 = vcmask 261120   ;;  %v64_v0 = vld [vmem:[#allocation5 + $0x18] sm:$0xff]  ;;  %v63_v1 = vld [vmem:[#allocation5 + $0x10] sm:$0xff]  ;;  %vm54_vm1 = vcmask 523264  }
  0x1d   :  { %179 = vmatprep.subr.mxu0 %v64_v0  ;;  %v59_v2 = vld [vmem:[#allocation2] sm:$0xff]  ;;  %v62_v3 = vld [vmem:[#allocation5 + $0x8] sm:$0xff]  ;;  %v61_v5 = vld [vmem:[#allocation5] sm:$0xff]  ;;  %s265_s1 = smov [#allocation7]  }
  0x1e   :  { %180 = vmatpush3.msra.mxu0 %v64_v0  ;;  %187 = vmatprep.mubr.msk.f32.mxu0 %vm65_vm0, %v59_v2  ;;  %v170_v4 = vld [vmem:[%s315_s2] ss:$0 sm:$0xff]  ;;  %v60_v6 = vld [vmem:[#allocation2 + $0x8] sm:$0xff]  ;;  %s157_s25 = sshll.u32 %s265_s1, 4  ;;  %s158_s25 = int_to_ptr.vmem [resolvable:$true] %s157_s25 }
  0x1f   :  { %181 = vmatprep.subr.mxu0 %v63_v1  ;;  %56 = vst.msk [vmem:[#allocation7 + $0x8] sm:$0xff] %vm54_vm1, %v170_v4  ;;  %55 = vst.msk [vmem:[#allocation7] sm:$0xff] %vm54_vm1, %v170_v4  ;;  %s235_s2 = scalar_lea.vmem %s158_s25, 256  ;;  %p240_p11 = scmp.lt.s32.totalorder %s158_s25, %s158_s25 }
  0x20   :  { %182 = vmatpush3.msra.mxu0 %v63_v1  ;;  %p236_p10 = scmp.ne.s32.totalorder %s158_s25, %s235_s2  ;;  %p241_p12 = scmp.lt.s32.totalorder %s235_s2, %s235_s2 }
  0x21   :  { %183 = vmatprep.subr.mxu0 %v62_v3 }
  0x22   :  { %184 = vmatpush3.msra.mxu0 %v62_v3  ;;  %p242_p13 = por %p241_p12, %p240_p11 }
  0x23   :  { %185 = vmatprep.subr.mxu0 %v61_v5 }
  0x24   :  { %186 = vmatpush3.msra.mxu0 %v61_v5  ;;  %p243_p0 = pnand %p242_p13, %p236_p10 }
  0x25   :  { %188 = vmatmul.mubr.msk.f32.vlgmr.msra.gmra.mxu0 %vm65_vm0, %v60_v6 }
  0x26   :  { %v58_v7 = vld [vmem:[#allocation7 + $0x8] sm:$0xff]  ;;  %v57_v9 = vld [vmem:[#allocation7] sm:$0xff] }
  0xe5   :  { %v189_v8 = vpop.f32.mrf.mxu0 }
  0xe6   :  { %v148_v10 = vadd.f32 %v189_v8, %v58_v7 }
  0xe7   :  { %v138_v11 = vpop.f32.mrf.mxu0 }
  0xe8   :  { %151 = vst.msk [vmem:[#allocation7 + $0x8] sm:$0xff] %vm54_vm1, %v148_v10  ;;  %v147_v12 = vadd.f32 %v138_v11, %v57_v9 }
  0xea   :  { %150 = vst.msk [vmem:[#allocation7] sm:$0xff] %vm54_vm1, %v147_v12 }
  0xeb   :  { %246 = shalt.err (!%p243_p0)
}
  0xec   :  { %163 = dma.vmem_to_hbm [thread:$0]  %s158_s25, 256, %s316_s3, [#allocation4], %s262_s15, %s262_s15, %s263_s16  }
  0xed   :  { %259 = dma.done.wait [#allocation4], 256  }
  0xee   :  { %260 = vsyncadd [#allocation4], 4294967040 }
  0xef   :  { %167 = vsyncpa [#allocation3], 1 }
  0xf0   :  { %168 = vsyncpa [#allocation6], 1 }
  0xf1   :  { %169 = vsyncpa [#allocation4], 1 }

</bundles_post_ra>
